<compile_context>
chip_gen: v7x
topology: tpu7x:2x2x1
jax: 0.10.0
libtpu: 0.0.40
codegen_flags: <defaults>
</compile_context>

<pallas_src>
import jax
import jax.numpy as jnp
from jax.experimental import pallas as pl
from jax.experimental.pallas import tpu as pltpu


def _round_up(x: int, m: int) -> int:
    return ((x + m - 1) // m) * m


def _cdiv(a: int, b: int) -> int:
    return -(-a // b)


def _mlp_gumbel_argmax(x_ref, w1_ref, b1_ref, w2_ref, b2_ref, g):
    """Shared body: feature-major 2-layer MLP + Gumbel-max argmax.

    x_ref: (MN, TB) bf16, w1_ref: (H, MN) bf16, b1_ref: (H, 1) f32,
    w2_ref: (N, H) bf16, b2_ref: (N, 1) f32, g: (N, TB) f32 Gumbel noise.
    Returns (1, TB) int32 class indices (lane-dense, batch on the lane axis).
    """
    # layer1: W1 @ x^T + b1, ReLU      (MXU: bf16 in, f32 accumulate)
    h = jnp.dot(w1_ref[...], x_ref[...], preferred_element_type=jnp.float32)   # (H, TB)
    h = jnp.maximum(h + b1_ref[...], 0.0)

    # layer2: W2 @ h^T + b2 -> logits^T, plus Gumbel noise (Gumbel-max categorical sample)
    z = jnp.dot(w2_ref[...], h.astype(w2_ref.dtype),
                preferred_element_type=jnp.float32)                            # (N, TB)
    z = z + b2_ref[...] + g

    n, tb = z.shape
    row = jax.lax.broadcasted_iota(jnp.int32, (n, tb), 0)
    zmax = jnp.max(z, axis=0, keepdims=True)                                   # (1, TB)
    # First index attaining the max (ties are measure-zero; handled deterministically).
    idx = jnp.min(jnp.where(z >= zmax, row, n), axis=0, keepdims=True)
    # Clamp so even a pathological (NaN) column still yields a valid one-hot downstream.
    return jnp.minimum(idx, n - 1).astype(jnp.int32)


def _node_function_kernel(x_ref, g_ref, w1_ref, b1_ref, w2_ref, b2_ref, idx_ref):
    """Default path: Gumbel noise streamed alongside the batch tile."""
    idx_ref[...] = _mlp_gumbel_argmax(x_ref, w1_ref, b1_ref, w2_ref, b2_ref, g_ref[...])


def _node_function_kernel_prng(seed_ref, x_ref, w1_ref, b1_ref, w2_ref, b2_ref, idx_ref):
    """Optional path: Gumbel noise generated in-kernel (no (N, B) side stream).

    Not the default because the stateful pltpu PRNG has no CPU/interpret lowering.
    """
    n = w2_ref.shape[0]
    tb = x_ref.shape[1]
    pltpu.prng_seed(seed_ref[0] + pl.program_id(0))          # distinct stream per tile
    bits = pltpu.prng_random_bits((n, tb))
    u24 = jnp.bitwise_and(bits, (1 << 24) - 1)               # non-negative 24-bit mantissa
    u = (u24.astype(jnp.float32) + 0.5) * (1.0 / (1 << 24))  # uniform in (0, 1)
    g = -jnp.log(-jnp.log(u))                                # standard Gumbel (EUP ops)
    idx_ref[...] = _mlp_gumbel_argmax(x_ref, w1_ref, b1_ref, w2_ref, b2_ref, g)


def node_function_forward(x, w1, b1, w2, b2, key, *, block_b=None, use_kernel_prng=False):
    """Forward pass of NodeFunction.

    x:   (B, M*N) — batch of concatenated, masked one-hot parent encodings.
    w1:  (H, M*N), b1: (H,), w2: (N, H), b2: (N,)   — PyTorch nn.Linear layout.
    key: jax PRNG key driving the categorical sample.
    Returns: (B, N) float32 one-hot samples.
    """
    B, MN = x.shape
    H = w1.shape[0]
    N = w2.shape[0]

    # --- batch tiling ------------------------------------------------------
    if block_b is None:
        block_b = min(2048, _round_up(B, 128))
        if B >= 256:
            # v7x: keep >= 2 grid steps so the "parallel" axis can span both TensorCores.
            block_b = min(block_b, _round_up(_cdiv(B, 2), 128))
    block_b = max(128, _round_up(block_b, 128))          # lane-dense tiles (multiple of 128)
    num_tiles = _cdiv(B, block_b)                        # partial last tile, no jnp.pad copy

    # Feature-major layout: transpose fused with the bf16 cast in ONE wrapper-side XLA copy.
    # (bf16 is exact for {0,1} one-hot inputs; soft encodings would lose precision.)
    x_t = x.astype(jnp.bfloat16).T                       # (MN, B)
    w1_bf = w1.astype(jnp.bfloat16)                      # (H, MN)  VMEM-resident
    w2_bf = w2.astype(jnp.bfloat16)                      # (N, H)   VMEM-resident
    b1_2d = b1.reshape(H, 1).astype(jnp.float32)
    b2_2d = b2.reshape(N, 1).astype(jnp.float32)

    x_spec = pl.BlockSpec((MN, block_b), lambda i: (0, i))      # streams (double-buffered)
    weight_specs = [
        pl.BlockSpec((H, MN), lambda i: (0, 0)),                # W1 (resident)
        pl.BlockSpec((H, 1), lambda i: (0, 0)),                 # b1
        pl.BlockSpec((N, H), lambda i: (0, 0)),                 # W2
        pl.BlockSpec((N, 1), lambda i: (0, 0)),                 # b2
    ]
    out_spec = pl.BlockSpec((1, block_b), lambda i: (0, i))     # lane-dense, unmasked stores

    # VMEM budget with explicit double-buffer terms; keep well under v7x's 64 MiB.
    resident = 2 * ((H * MN + N * H) * 2 + (H + N) * 4)
    streamed = 2 * block_b * (MN * 2 + (0 if use_kernel_prng else N * 4))
    out_bytes = 2 * block_b * 4
    interm = block_b * (H + 2 * N) * 4
    vmem_limit = int(min(48 * 2**20,
                         max(8 * 2**20, 2 * (resident + streamed + out_bytes + interm))))

    if use_kernel_prng:
        seed = jax.random.randint(key, (1,), 0, jnp.iinfo(jnp.int32).max, dtype=jnp.int32)
        grid_spec = pltpu.PrefetchScalarGridSpec(
            num_scalar_prefetch=0,
            grid=(num_tiles,),
            in_specs=[pl.BlockSpec(memory_space=pltpu.MemorySpace.SMEM), x_spec]
                     + weight_specs,
            out_specs=out_spec)
        kernel = _node_function_kernel_prng
        args = (seed, x_t, w1_bf, b1_2d, w2_bf, b2_2d)
    else:
        # Gumbel-max trick: exact categorical sampler; noise generated feature-major so it
        # streams lane-dense with no transpose anywhere.
        g_t = jax.random.gumbel(key, (N, B), dtype=jnp.float32)
        g_spec = pl.BlockSpec((N, block_b), lambda i: (0, i))
        grid_spec = pltpu.PrefetchScalarGridSpec(
            num_scalar_prefetch=0,
            grid=(num_tiles,),
            in_specs=[x_spec, g_spec] + weight_specs,
            out_specs=out_spec)
        kernel = _node_function_kernel
        args = (x_t, g_t, w1_bf, b1_2d, w2_bf, b2_2d)

    idx = pl.pallas_call(
        kernel,
        out_shape=jax.ShapeDtypeStruct((1, num_tiles * block_b), jnp.int32),
        grid_spec=grid_spec,
        compiler_params=pltpu.CompilerParams(
            dimension_semantics=("parallel",),      # batch tiles independent -> 2 TCs on v7x
            vmem_limit_bytes=vmem_limit,
        ),
    )(*args)

    inds = idx[0, :B]
    # Narrow (B, N=8) one-hot is built by XLA outside the kernel (kernel output stays
    # lane-dense int32 indices).
    return jax.nn.one_hot(inds, N, dtype=jnp.float32)


def init_node_function_params(key, N, M, H, bias_init_bound=0.2):
    """Matches the PyTorch module's reset(): kaiming_normal_ (fan_in, gain=sqrt(2)) for the
    weights, uniform(-b, b) for the biases.  Weights use the PyTorch (out, in) layout."""
    k1, k2, k3, k4 = jax.random.split(key, 4)
    w1 = jax.random.normal(k1, (H, N * M), jnp.float32) * jnp.sqrt(2.0 / (N * M))
    w2 = jax.random.normal(k2, (N, H), jnp.float32) * jnp.sqrt(2.0 / H)
    b1 = jax.random.uniform(k3, (H,), jnp.float32, -bias_init_bound, bias_init_bound)
    b2 = jax.random.uniform(k4, (N,), jnp.float32, -bias_init_bound, bias_init_bound)
    return w1, b1, w2, b2


if __name__ == "__main__":
    # Small shapes consistent with the module: N values per node, M nodes, hidden H.
    N, M, H = 8, 4, 32
    batch = 300   # with block_b=128: 3 grid steps incl. a partial last tile (no padding)

    key = jax.random.PRNGKey(0)
    kp, kx, ks = jax.random.split(key, 3)

    w1, b1, w2, b2 = init_node_function_params(kp, N, M, H, bias_init_bound=0.2)

    # Input: batch of concatenated one-hot parent encodings, shape (B, M*N), with the
    # first parent block masked out (module expects masked inputs).
    parent_vals = jax.random.randint(kx, (batch, M), 0, N)
    x = jax.nn.one_hot(parent_vals, N, dtype=jnp.float32).reshape(batch, M * N)
    x = x.at[:, :N].set(0.0)

    out = node_function_forward(x, w1, b1, w2, b2, ks, block_b=128)
    out = jax.block_until_ready(out)

    assert out.shape == (batch, N)
    assert out.dtype == jnp.float32
    # Each row must be a valid one-hot vector.
    assert bool(jnp.all(jnp.sum(out, axis=-1) == 1.0))
    assert bool(jnp.all((out == 0.0) | (out == 1.0)))

    print("KERNEL_OK")
</pallas_src>

<mosaic_0001>
module attributes {stable_mosaic.version = 11 : i64} {
  func.func @_node_function_kernel(%arg0: i32, %arg1: memref<32x128xbf16, #tpu.memory_space<vmem>>, %arg2: memref<8x128xf32, #tpu.memory_space<vmem>>, %arg3: memref<32x32xbf16, #tpu.memory_space<vmem>>, %arg4: memref<32x1xf32, #tpu.memory_space<vmem>>, %arg5: memref<8x32xbf16, #tpu.memory_space<vmem>>, %arg6: memref<8x1xf32, #tpu.memory_space<vmem>>, %arg7: memref<1x128xi32, #tpu.memory_space<vmem>>) attributes {dimension_semantics = [#tpu.dimension_semantics<parallel>], iteration_bounds = array<i64: 3>, scalar_prefetch = 0 : i64, scratch_operands = 0 : i64, tpu.core_type = #tpu.core_type<tc>, window_params = [{transform_indices = @transform_0, window_bounds = array<i64: 32, 128>}, {transform_indices = @transform_1, window_bounds = array<i64: 8, 128>}, {pipeline_mode = #tpu.pipeline_mode<synchronous>, transform_indices = @transform_2, window_bounds = array<i64: 32, 32>}, {pipeline_mode = #tpu.pipeline_mode<synchronous>, transform_indices = @transform_3, window_bounds = array<i64: 32, 1>}, {pipeline_mode = #tpu.pipeline_mode<synchronous>, transform_indices = @transform_4, window_bounds = array<i64: 8, 32>}, {pipeline_mode = #tpu.pipeline_mode<synchronous>, transform_indices = @transform_5, window_bounds = array<i64: 8, 1>}, {transform_indices = @transform_6, window_bounds = array<i64: 1, 128>}]} {
    %c0 = arith.constant 0 : index
    %c0_0 = arith.constant 0 : index
    %0 = vector.load %arg2[%c0, %c0_0] : memref<8x128xf32, #tpu.memory_space<vmem>>, vector<8x128xf32>
    %c0_1 = arith.constant 0 : index
    %c0_2 = arith.constant 0 : index
    %1 = vector.load %arg3[%c0_1, %c0_2] : memref<32x32xbf16, #tpu.memory_space<vmem>>, vector<32x32xbf16>
    %c0_3 = arith.constant 0 : index
    %c0_4 = arith.constant 0 : index
    %2 = vector.load %arg1[%c0_3, %c0_4] : memref<32x128xbf16, #tpu.memory_space<vmem>>, vector<32x128xbf16>
    %cst = arith.constant dense<0.000000e+00> : vector<32x128xf32>
    %3 = tpu.matmul %1, %2, %cst {dimension_numbers = #tpu.dot_dimension_numbers<[1], [0], [0], [1], [0, 0, 1, 1], [], []>} : vector<32x32xbf16>, vector<32x128xbf16>, vector<32x128xf32> -> vector<32x128xf32>
    %c0_5 = arith.constant 0 : index
    %c0_6 = arith.constant 0 : index
    %4 = vector.load %arg4[%c0_5, %c0_6] : memref<32x1xf32, #tpu.memory_space<vmem>>, vector<32x1xf32>
    %5 = vector.broadcast %4 : vector<32x1xf32> to vector<32x128xf32>
    %6 = arith.addf %3, %5 : vector<32x128xf32>
    %cst_7 = arith.constant 0.000000e+00 : f32
    %7 = vector.broadcast %cst_7 : f32 to vector<32x128xf32>
    %8 = arith.maximumf %6, %7 : vector<32x128xf32>
    %c0_8 = arith.constant 0 : index
    %c0_9 = arith.constant 0 : index
    %9 = vector.load %arg5[%c0_8, %c0_9] : memref<8x32xbf16, #tpu.memory_space<vmem>>, vector<8x32xbf16>
    %10 = arith.truncf %8 : vector<32x128xf32> to vector<32x128xbf16>
    %cst_10 = arith.constant dense<0.000000e+00> : vector<8x128xf32>
    %11 = tpu.matmul %9, %10, %cst_10 {dimension_numbers = #tpu.dot_dimension_numbers<[1], [0], [0], [1], [0, 0, 1, 1], [], []>} : vector<8x32xbf16>, vector<32x128xbf16>, vector<8x128xf32> -> vector<8x128xf32>
    %c0_11 = arith.constant 0 : index
    %c0_12 = arith.constant 0 : index
    %12 = vector.load %arg6[%c0_11, %c0_12] : memref<8x1xf32, #tpu.memory_space<vmem>>, vector<8x1xf32>
    %13 = vector.broadcast %12 : vector<8x1xf32> to vector<8x128xf32>
    %14 = arith.addf %11, %13 : vector<8x128xf32>
    %15 = arith.addf %14, %0 : vector<8x128xf32>
    %16 = tpu.iota {dimensions = array<i32: 0>} : vector<8x128xi32>
    %cst_13 = arith.constant dense<0xFF800000> : vector<128xf32>
    %17 = vector.multi_reduction <maximumf>, %15, %cst_13 [0] : vector<8x128xf32> to vector<128xf32>
    %18 = vector.shape_cast %17 : vector<128xf32> to vector<1x128xf32>
    %19 = vector.broadcast %18 : vector<1x128xf32> to vector<8x128xf32>
    %20 = arith.cmpf oge, %15, %19 : vector<8x128xf32>
    %c8_i32 = arith.constant 8 : i32
    %21 = vector.broadcast %c8_i32 : i32 to vector<8x128xi32>
    %22 = arith.select %20, %16, %21 : vector<8x128xi1>, vector<8x128xi32>
    %cst_14 = arith.constant dense<2147483647> : vector<128xi32>
    %23 = vector.multi_reduction <minsi>, %22, %cst_14 [0] : vector<8x128xi32> to vector<128xi32>
    %24 = vector.shape_cast %23 : vector<128xi32> to vector<1x128xi32>
    %c7_i32 = arith.constant 7 : i32
    %25 = vector.broadcast %c7_i32 : i32 to vector<1x128xi32>
    %26 = arith.minsi %24, %25 : vector<1x128xi32>
    %c0_15 = arith.constant 0 : index
    %c0_16 = arith.constant 0 : index
    %27 = vector.load %arg7[%c0_15, %c0_16] : memref<1x128xi32, #tpu.memory_space<vmem>>, vector<1x128xi32>
    tpu.vector_store %arg7[%c0_15, %c0_16], %26 {strides = array<i32>} : memref<1x128xi32, #tpu.memory_space<vmem>>, vector<1x128xi32>,
    return
  }
  func.func @transform_0(%arg0: i32) -> (i32, i32) {
    %c0_i32 = arith.constant 0 : i32
    %c0_i32_0 = arith.constant 0 : i32
    return %c0_i32, %arg0 : i32, i32
  }
  func.func @transform_1(%arg0: i32) -> (i32, i32) {
    %c0_i32 = arith.constant 0 : i32
    %c0_i32_0 = arith.constant 0 : i32
    return %c0_i32, %arg0 : i32, i32
  }
  func.func @transform_2(%arg0: i32) -> (i32, i32) {
    %c0_i32 = arith.constant 0 : i32
    %c0_i32_0 = arith.constant 0 : i32
    %c0_i32_1 = arith.constant 0 : i32
    return %c0_i32, %c0_i32_0 : i32, i32
  }
  func.func @transform_3(%arg0: i32) -> (i32, i32) {
    %c0_i32 = arith.constant 0 : i32
    %c0_i32_0 = arith.constant 0 : i32
    %c0_i32_1 = arith.constant 0 : i32
    return %c0_i32, %c0_i32_0 : i32, i32
  }
  func.func @transform_4(%arg0: i32) -> (i32, i32) {
    %c0_i32 = arith.constant 0 : i32
    %c0_i32_0 = arith.constant 0 : i32
    %c0_i32_1 = arith.constant 0 : i32
    return %c0_i32, %c0_i32_0 : i32, i32
  }
  func.func @transform_5(%arg0: i32) -> (i32, i32) {
    %c0_i32 = arith.constant 0 : i32
    %c0_i32_0 = arith.constant 0 : i32
    %c0_i32_1 = arith.constant 0 : i32
    return %c0_i32, %c0_i32_0 : i32, i32
  }
  func.func @transform_6(%arg0: i32) -> (i32, i32) {
    %c0_i32 = arith.constant 0 : i32
    %c0_i32_0 = arith.constant 0 : i32
    return %c0_i32, %arg0 : i32, i32
  }
}

</mosaic_0001>

<bundles_post_ra>
// kernel: tpu_custom_call.1
= control target key start
LH: loop header
LB: loop body
LE: loop exit
PB: predicated region body
PF: predicated region fallthrough
CT: control target
= control target key end

     0   :  { %11 = vsyncpa [#allocation3], 0  ;;  %s1000_s0 = inlined_call_operand.hbm [shape: bf16[32,300], index: 0, kind: input, shape index: {}]   ;;  %s1001_s1 = inlined_call_operand.vmem [shape: f32[8,300], index: 1, kind: input, shape index: {}]   ;;  %s1002_s2 = inlined_call_operand.vmem [shape: bf16[32,32], index: 2, kind: input, shape index: {}]   ;;  %s1003_s3 = inlined_call_operand.vmem [shape: f32[32,1], index: 3, kind: input, shape index: {}]   ;;  %s1004_s4 = inlined_call_operand.vmem [shape: bf16[8,32], index: 4, kind: input, shape index: {}]   ;;  %s1005_s5 = inlined_call_operand.vmem [shape: f32[8,1], index: 5, kind: input, shape index: {}]   ;;  %s1006_s6 = inlined_call_operand.hbm [shape: s32[1,384], index: 6, kind: output, shape index: {}]  }
   0x1   :  { %13 = vsyncpa [#allocation3 + $0x1], 0 }
   0x2   :  { %14 = vsyncpa [#allocation4], 0 }
   0x3   :  { %16 = vsyncpa [#allocation4 + $0x1], 0  ;;  %s807_s21 = smov 0   ;;  %s809_s22 = smov 0  }
   0x4   :  { %s811_s23 = smov 0   ;;  %s813_s24 = smov 0  }
   0x5 LB: > { %s828_s25 = sadd.s32 4294967295, %s762_s24   ;;  %s567_s26 = sadd.s32 4294967294, %s762_s24   ;;  %s762_s24 = sphi %s813_s24, %s1019_s24   ;;  %s758_s23 = sphi %s811_s23, %s1018_s23   ;;  %s754_s22 = sphi %s809_s22, %s1017_s22   ;;  %s750_s21 = sphi %s807_s21, %s1016_s21  }
   0x6   : > { %s832_s27 = sadd.s32 1, %s762_s24   ;;  %s29_s28 = sadd.s32 1, %s758_s23 }
   0x7   : > { %s26_s29 = ssub.s32 %s762_s24, %s832_s27  ;;  %p36_p0 = scmp.ne.s32.totalorder %s758_s23, %s754_s22 }
   0x8   : > { %p27_p1 = scmp.eq.s32.totalorder %s26_s29, 0  ;;  %p37_p2 = scmp.eq.s32.totalorder %s762_s24, 0 }
   0x9   : > { %p42_p3 = scmp.ne.s32.totalorder %s754_s22, %s750_s21  ;;  %p43_p4 = scmp.eq.s32.totalorder %s828_s25, 0 }
   0xa   : > { %s844_s30 = scalar_select %p27_p1, %s758_s23, %s29_s28  }
   0xb   : > { %p846_p5 = por %p37_p2, %p36_p0  ;;  %p850_p6 = por %p43_p4, %p42_p3 }
   0xc   : > { %p176_p7 = scmp.eq.s32.totalorder %s828_s25, 2  ;;  %p182_p8 = scmp.eq.s32.totalorder %s567_s26, 2 }
   0xd   : > { %p620_p9 = scmp.lt.s32.totalorder %s762_s24, 3  ;;  %s214_s11 = sand.u32 1, %s758_s23  }
   0xe   : > { %p856_p10 = por %p176_p7, %p36_p0  ;;  %p860_p11 = por %p182_p8, %p42_p3 }
   0xf   : > { %s571_s12 = sshll.u32 %s762_s24, 6  ;;  %s570_s13 = sshll.u32 %s214_s11, 4 }
  0x10   : > { %s1010_s9 = scalar_select %p856_p10, 1, 0 }
  0x11   : > { %s1011_s10 = scalar_select %p860_p11, 1, 0 }
  0x12   : > { %s869_s16 = scalar_lea.hbm %s1000_s0, %s571_s12  ;;  %s218_s17 = scalar_lea.vmem [#allocation2], %s570_s13 }
  0x13   : > { %s224_s18 = sshll.u32 %s218_s17, 4  ;;  %p873_p12 = pnand %p620_p9, %p846_p5  ;;  %s877_s18 = int_to_ptr.vmem [resolvable:$true] %s224_s18 }
  0x14   : > { %s880_s20 = scalar_lea.sflag [#allocation3], %s214_s11  ;;  %s666_s26 = scalar_lea.hbm %s869_s16, 256 }
  0x15   : > { %p667_p0 = scmp.ne.s32.totalorder %s869_s16, %s666_s26  ;;  %p668_p1 = pneg %p873_p12 }
  0x16   : > { %s671_s7 = scalar_lea.hbm %s1000_s0, 768  ;;  %p672_p4 = scmp.lt.u32.totalorder %s869_s16, %s1000_s0 }
  0x17   : > { %p669_p2 = pnand %p668_p1, %p667_p0  ;;  %p673_p5 = scmp.lt.u32.totalorder %s671_s7, %s666_s26 }
  0x18   : > { %p675_p8 = scmp.lt.u32.totalorder %s666_s26, %s869_s16 }
  0x19   : > { %p670_p3 = pneg %p669_p2  ;;  %p674_p7 = por %p673_p5, %p672_p4 }
  0x1b   : > { %p676_p9 = por %p675_p8, %p674_p7 }
  0x1d   : > { %p677_p13 = pnand %p676_p9, %p670_p3 }
  0x1f   : > { %680 = shalt.err (!%p677_p13)
}
  0x20   : > { %s681_s11 = scalar_lea.vmem %s877_s18, 256  ;;  %s764_s14 = smov [#allocation2]  }
  0x21   : > { %p682_p0 = scmp.ne.s32.totalorder %s877_s18, %s681_s11  ;;  %s686_s15 = sshll.u32 %s764_s14, 4  ;;  %s687_s15 = int_to_ptr.vmem [resolvable:$false] %s686_s15 }
  0x22   : > { %s688_s17 = scalar_lea.vmem %s687_s15, 512  ;;  %p689_p10 = scmp.lt.s32.totalorder %s877_s18, %s687_s15 }
  0x23   : > { %p684_p2 = pnand %p682_p0, %p668_p1  ;;  %p690_p4 = scmp.lt.s32.totalorder %s688_s17, %s681_s11 }
  0x25   : > { %p685_p11 = pneg %p684_p2  ;;  %p691_p5 = por %p690_p4, %p689_p10 }
  0x27   : > { %p692_p7 = pnand %p691_p5, %p685_p11 }
  0x29   : > { %695 = shalt.err (!%p692_p7)
}
  0x2a   : > { %s765_s26 = smov 192   ;;  %s766_s28 = smov 64  }
  0x2b   : > { %s767_s29 = smov 4   ;;  %p239_p13 = scmp.lt.s32.totalorder %s762_s24, 4 }
  0x2c   : > { %615 = dma.hbm_to_vmem [thread:$0]  (!%p873_p12), %s869_s16, 256, %s877_s18, %s880_s20, %s765_s26, %s766_s28, %s767_s29  }
  0x2d   : > { %p1013_p1 = scmp.ge.s32.totalorder %s762_s24, 1 }
  0x2f   : > { %p240_p3 = pnand %p1013_p1, %p239_p13 }
  0x30   : > { %s912_s7 = sand.u32 (!%p240_p3), 1, %s754_s22  }
  0x31   : > { %243 = sbr.rel (%p240_p3) target bundleno = 553 (0x229), region = 44  ;;  %s573_s12 = sshll.u32 (!%p240_p3), %s912_s7, 4 }
  0x32   : > { %s246_s13 = scalar_lea.sflag (!%p240_p3), [#allocation3], %s912_s7  ;;  %s249_s11 = scalar_lea.vmem (!%p240_p3), [#allocation2], %s573_s12 }
  0x38   : > { %741 = dma.done.wait (%p850_p6), %s246_s13, 256  }
  0x39   : > { %743 = vsyncadd (%p850_p6), %s246_s13, 4294967040  ;;  %v768_v0 = vmov 0   ;;  %v662_v1 = vld [vmem:[%s249_s11] sm:$0xff]   ;;  %v663_v2 = vld [vmem:[%s249_s11 + $0x8] sm:$0xff]   ;;  %vm341_vm0 = vcmask 261120   ;;  %v769_v10 = vmov 0.0   ;;  %v454_v41 = vlaneseq }
  0x3a   : > { %660 = vset.pattern.permute.xlu0 %v768_v0  ;;  %661 = vset.pattern.permute.xlu1 %v768_v0  ;;  %v664_v3 = vld [vmem:[%s1002_s2] sm:$0xff]   ;;  %v297_v5 = vld [vmem:[%s1003_s3 + $0x10] sm:$0xff]  ;;  %v665_v6 = vld [vmem:[%s1002_s2 + $0x8] sm:$0xff]   ;;  %vm770_vm1 = vmmov 0   ;;  %p281_p6 = scmp.lt.s32.totalorder %s828_s25, 2  ;;  %s582_s17 = sshll.u32 %s828_s25, 4 }
  0x3b   : > { %592 = vmatprep.subr.bf16.mxu0 %v662_v1  ;;  %596 = vmatprep.mubr.msk.bf16.mxu0 %vm341_vm0, %v664_v3  ;;  %v295_v4 = vld [vmem:[%s1003_s3] sm:$0xff]  ;;  %v296_v7 = vld [vmem:[%s1003_s3 + $0x8] sm:$0xff]  ;;  %v298_v8 = vld [vmem:[%s1003_s3 + $0x18] sm:$0xff]  ;;  %v455_v44 = vshrl.u32 %v454_v41, 7  ;;  %s280_s26 = scalar_lea.vmem [#allocation5], %s912_s7  ;;  %s957_s13 = scalar_lea.hbm %s1006_s6, %s582_s17 }
  0x3c   : > { %593 = vmatpush3.bf16.msra.mxu0 %v662_v1  ;;  %301 = vperm.xlu0 %660, %v295_v4   ;;  %v404_v9 = vld [vmem:[%s1005_s5] sm:$0xff]  ;;  %s282_s19 = scalar_select %p281_p6, %s828_s25, 2 }
  0x3d   : > { %594 = vmatprep.subr.bf16.mxu0 %v663_v2  ;;  %311 = vperm.xlu1 %661, %v297_v5   ;;  %v401_v29 = vld [vmem:[%s1004_s4] sm:$0xf]  ;;  %s489_s28 = sshll.u32 %s280_s26, 4  ;;  %s477_s11 = scalar_lea.sflag [#allocation4], %s912_s7  ;;  %s959_s28 = int_to_ptr.vmem [resolvable:$true] %s489_s28 }
  0x3e   : > { %600 = vmatprep.subr.bf16.mxu1 %v769_v10  ;;  %604 = vmatprep.mubr.msk.bf16.mxu1 %vm770_vm1, %v769_v10  ;;  %s574_s20 = sshll.u32 %s282_s19, 3  ;;  %s696_s16 = scalar_lea.vmem %s959_s28, 16 }
  0x3f   : > { %s284_s15 = scalar_lea.vmem %s1001_s1, %s574_s20  ;;  %p697_p10 = scmp.ne.s32.totalorder %s959_s28, %s696_s16 }
  0x40   : > { %595 = vmatpush3.bf16.msra.mxu0 %v663_v2  ;;  %306 = vperm.xlu0 %660, %v296_v7   ;;  %v286_v31 = vld [vmem:[%s284_s15] sm:$0xff]  ;;  %p1014_p11 = scmp.ne.s32.totalorder %s1010_s9, 0  ;;  %s771_s25 = smov [#allocation5]  }
  0x41   : > { %316 = vperm.xlu1 %661, %v298_v8   ;;  %s700_s18 = sshll.u32 %s771_s25, 4  ;;  %s701_s18 = int_to_ptr.vmem [resolvable:$false] %s700_s18 }
  0x42   : > { %p698_p12 = pnand %p697_p10, %p1014_p11  ;;  %s702_s19 = scalar_lea.vmem %s701_s18, 32 }
  0x43   : > { %597 = vmatmul.mubr.msk.bf16.vlgmr.msra.gmra.mrb[0].mxu0 %vm341_vm0, %v665_v6  ;;  %p703_p9 = scmp.lt.s32.totalorder %s959_s28, %s701_s18  ;;  %p704_p0 = scmp.lt.s32.totalorder %s702_s19, %s696_s16 }
  0x44   : > { %407 = vperm.xlu0 %660, %v404_v9   ;;  %p699_p8 = pneg %p698_p12 }
  0x45   : > { %p705_p2 = por %p704_p0, %p703_p9 }
  0x47   : > { %p706_p4 = pnand %p705_p2, %p699_p8 }
  0xbb   : > { %v302_v12 = vpop.permute.xlu0 %301 }
  0xbc   : > { %v312_v11 = vpop.permute.xlu1 %311 }
  0xbf   : > { %v307_v19 = vpop.permute.xlu0 %306 }
  0xc0   : > { %v317_v14 = vpop.permute.xlu1 %316 }
  0xc3   : > { %v408_v30 = vpop.permute.xlu0 %407 }
 0x116   : > { %v598_v13 = vpop.f32.mrb[0].mxu0 }
 0x117   : > { %v391_v15 = vadd.f32 %v598_v13, %v312_v11  ;;  %v382_v16 = vpop.f32.mrb[1].mxu0 }
 0x118   : > { %v383_v17 = vadd.f32 %v382_v16, %v302_v12  ;;  %v599_v18 = vpop.f32.mrb[2].mxu0 }
 0x119   : > { %v394_v20 = vadd.f32 %v599_v18, %v317_v14  ;;  %v385_v21 = vpop.f32.mrb[3].mxu0  ;;  %v399_v23 = vmax.f32 %v391_v15, 0.0 }
 0x11a   : > { %v386_v22 = vadd.f32 %v385_v21, %v307_v19  ;;  %v397_v25 = vmax.f32 %v383_v17, 0.0 }
 0x11b   : > { %v400_v24 = vmax.f32 %v394_v20, 0.0 }
 0x11c   : > { %v398_v26 = vmax.f32 %v386_v22, 0.0 }
 0x11d   : > { %v403_v27 = vpack.c.bf16 %v400_v24, %v399_v23 }
 0x11e   : > { %v402_v28 = vpack.c.bf16 %v398_v26, %v397_v25 }
 0x120   : > { %601 = vmatpush3.bf16.msra.mxu1 %v402_v28 }
 0x121   : > { %602 = vmatprep.subr.bf16.mxu1 %v769_v10 }
 0x124   : > { %603 = vmatpush3.bf16.msra.mxu1 %v403_v27 }
 0x127   : > { %605 = vmatmul.mubr.msk.bf16.vlgmr.msra.gmra.mrb[0].mxu1 %vm341_vm0, %v401_v29 }
 0x1fa   : > { %v447_v32 = vpop.f32.mrb[0].mxu1 }
 0x1fb   : > { %v448_v33 = vadd.f32 %v447_v32, %v408_v30  ;;  %v606_v34 = vpop.f32.mrb[1].mxu1 }
 0x1fc   : > { %v450_v35 = vpop.f32.mrb[2].mxu1 }
 0x1fd   : > { %v453_v36 = vadd.f32 %v448_v33, %v286_v31  ;;  %v607_v37 = vpop.f32.mrb[3].mxu1 }
 0x1ff   : > { %v456_v38 = vrot.slane %v453_v36, 4 }
 0x201   : > { %v457_v39 = vmax.f32 %v453_v36, %v456_v38 }
 0x203   : > { %v458_v40 = vrot.slane %v457_v39, 2 }
 0x205   : > { %v459_v42 = vmax.f32 %v457_v39, %v458_v40 }
 0x207   : > { %v460_v43 = vrot.slane %v459_v42, 1 }
 0x209   : > { %v461_v45 = vmax.f32 %v459_v42, %v460_v43 }
 0x20b   : > { %vm462_vm2 = vcmp.ge.f32.partialorder %v453_v36, %v461_v45 }
 0x20c   : > { %v463_v46 = vsel %vm462_vm2, %v455_v44, 8 }
 0x20d   : > { %v464_v47 = vrot.slane %v463_v46, 4 }
 0x20f   : > { %vm465_vm3 = vcmp.lt.s32.totalorder %v463_v46, %v464_v47 }
 0x210   : > { %v466_v48 = vsel %vm465_vm3, %v463_v46, %v464_v47 }
 0x211   : > { %v467_v49 = vrot.slane %v466_v48, 2 }
 0x213   : > { %vm468_vm4 = vcmp.lt.s32.totalorder %v466_v48, %v467_v49 }
 0x214   : > { %v469_v50 = vsel %vm468_vm4, %v466_v48, %v467_v49 }
 0x215   : > { %v470_v51 = vrot.slane %v469_v50, 1 }
 0x217   : > { %vm471_vm5 = vcmp.lt.s32.totalorder %v469_v50, %v470_v51 }
 0x218   : > { %v472_v52 = vsel %vm471_vm5, %v469_v50, %v470_v51 }
 0x219   : > { %vm473_vm6 = vcmp.lt.s32.totalorder %v472_v52, 7 }
 0x21a   : > { %v474_v53 = vsel %vm473_vm6, %v472_v52, 7 }
 0x21b   : > { %475 = vst [vmem:[%s280_s26] sm:$0x1] %v474_v53 }
 0x21c   : > { %709 = shalt.err (!%p706_p4)
}
 0x21d   : > { %s710_s7 = scalar_lea.hbm %s957_s13, 16  ;;  %s714_s14 = scalar_lea.hbm %s1006_s6, 48 }
 0x21e   : > { %p711_p5 = scmp.ne.s32.totalorder %s957_s13, %s710_s7  ;;  %p715_p1 = scmp.lt.u32.totalorder %s957_s13, %s1006_s6 }
 0x21f   : > { %p716_p3 = scmp.lt.u32.totalorder %s714_s14, %s710_s7  ;;  %p718_p10 = scmp.lt.u32.totalorder %s710_s7, %s957_s13 }
 0x220   : > { %p712_p7 = pnand %p711_p5, %p1014_p11 }
 0x221   : > { %p717_p6 = por %p716_p3, %p715_p1 }
 0x222   : > { %p713_p13 = pneg %p712_p7 }
 0x223   : > { %p719_p12 = por %p718_p10, %p717_p6 }
 0x225   : > { %p720_p8 = pnand %p719_p12, %p713_p13 }
 0x227   : > { %723 = shalt.err (!%p720_p8)
}
 0x228   : > { %610 = dma.vmem_to_hbm [thread:$0]  (%p1014_p11), %s959_s28, 16, %s957_s13, %s477_s11  }
 0x229 PF: > { %p621_p9 = scmp.ge.s32.totalorder %s762_s24, 2  ;;  %s501_s26 = sand.u32 1, %s750_s21  }
 0x22a   : > { %p1015_p0 = scmp.ne.s32.totalorder %s1011_s10, 0  ;;  %s502_s29 = scalar_lea.sflag [#allocation4], %s501_s26 }
 0x22c   : > { %p617_p2 = pnand %p621_p9, %p1015_p0 }
 0x22e   : > { %745 = dma.done.wait (!%p617_p2), %s502_s29, 16  }
 0x22f   : > { %747 = vsyncadd (!%p617_p2), %s502_s29, 4294967280  ;;  %p19_p4 = scmp.ge.s32.totalorder %s832_s27, 5   ;;  %s1016_s21 = smov %s754_s22 }
 0x230   : > { %s1017_s22 = smov %s758_s23  ;;  %s1018_s23 = smov %s844_s30 }
 0x231   : > { %s1019_s24 = smov %s832_s27  ;;  %21 = sbr.rel (!%p19_p4) target bundleno = 5 (0x5), region = 92 }
 0x238   :  { %506 = vsyncpa [#allocation3], 1 }
 0x239   :  { %508 = vsyncpa [#allocation3 + $0x1], 1 }
 0x23a   :  { %509 = vsyncpa [#allocation4], 1 }
 0x23b   :  { %511 = vsyncpa [#allocation4 + $0x1], 1 }

</bundles_post_ra>
